<compile_context>
chip_gen: v7x
topology: tpu7x:2x2x1
jax: 0.10.0
libtpu: 0.0.40
codegen_flags: <defaults>
</compile_context>

<pallas_src>
import jax
import jax.numpy as jnp
from jax.experimental import pallas as pl
from jax.experimental.pallas import tpu as pltpu


# ---------------------------------------------------------------------------
# Shared per-row math: NLL of the gold frame + first-occurrence argmax stats.
# ---------------------------------------------------------------------------
def _stats_from_gold_rows(lvf, rid, vlab, vl, loss_ref, ncorr_ref):
    """lvf: (Bt, V, F) f32 gold-predicate rows (F on the 128-lane axis)."""
    Bt, V, F = lvf.shape
    iota_f = jax.lax.broadcasted_iota(jnp.int32, (Bt, V, F), 2)

    # Gold-frame log-prob: lane select + lane reduce (no one-hot temporary).
    gathered = jnp.sum(jnp.where(iota_f == rid, lvf, 0.0),
                       axis=2, keepdims=True)                     # (Bt, V, 1)
    # Use where (not multiply) so rows whose DMA was skipped can never
    # pollute the sum even if stale VMEM happens to hold NaN/inf.
    v_mask = vlab != 0                                            # (Bt, V, 1)
    loss_ref[...] = -jnp.sum(jnp.where(v_mask, gathered, 0.0),
                             axis=1, keepdims=True)

    # First-occurrence argmax over frames for the accuracy counter.
    row_max = jnp.max(lvf, axis=2, keepdims=True)
    pred = jnp.min(jnp.where(lvf == row_max, iota_f, F),
                   axis=2, keepdims=True)                         # (Bt, V, 1)
    iota_v = jax.lax.broadcasted_iota(jnp.int32, (Bt, V, 1), 1)
    valid = iota_v < vl
    correct = jnp.where(jnp.logical_and(pred == rid, valid), 1, 0)
    ncorr_ref[...] = jnp.sum(correct, axis=1, keepdims=True).astype(jnp.int32)


# ---------------------------------------------------------------------------
# Dense path: stream (Bt, S, F) blocks, gather gold rows in VMEM (one-hot MXU)
# ---------------------------------------------------------------------------
def _frame_loss_dense_kernel(rid_ref, vlab_ref, vl_ref, lf_ref,
                             loss_ref, ncorr_ref):
    Bt, S, F = lf_ref.shape
    V = rid_ref.shape[1]
    lf = lf_ref[...]                                              # (Bt, S, F)
    vlab = vlab_ref[...]                                          # (Bt, V, 1)

    # One-hot (Bt,V,S) @ (Bt,S,F) gather of the V gold rows: for short rows
    # this beats Bt*V tiny scattered HBM reads.
    iota_s = jax.lax.broadcasted_iota(jnp.int32, (Bt, V, S), 2)
    onehot = (iota_s == vlab).astype(lf.dtype)
    lvf = jnp.einsum('bvs,bsf->bvf', onehot, lf,
                     preferred_element_type=jnp.float32)          # (Bt, V, F)

    _stats_from_gold_rows(lvf, rid_ref[...], vlab, vl_ref[...],
                          loss_ref, ncorr_ref)


# ---------------------------------------------------------------------------
# Gather path: manual row DMAs from HBM, cross-step double-buffered.
# ---------------------------------------------------------------------------
def _frame_loss_gather_kernel(vlab_smem, vl_smem,
                              rid_ref, vlab_ref, vl_ref, lf_hbm,
                              loss_ref, ncorr_ref,
                              lvf_buf, sem):
    """Grid (B // Bt,), run sequentially ("arbitrary"): step s prefetches
    step s+1's gold rows into the other half of lvf_buf, so the scattered-row
    DMA latency hides behind the previous step's compute.

    vlab_smem : (B, V)  i32 SMEM (scalar prefetch) - predicate positions
    vl_smem   : (B,)    i32 SMEM (scalar prefetch) - #valid predicates
    rid_ref   : (Bt,V,1) i32 VMEM      vlab_ref : (Bt,V,1) i32 VMEM
    vl_ref    : (Bt,1,1) i32 VMEM      lf_hbm   : (B,S,F) HBM ref (pl.ANY)
    loss_ref  : (Bt,1,1) f32 out       ncorr_ref: (Bt,1,1) i32 out
    lvf_buf   : (2*Bt, V, F) VMEM scratch (two slots of Bt batch elems each)
    sem       : (2*Bt,) DMA semaphores (one per slot x batch element)
    """
    step = pl.program_id(0)
    nsteps = pl.num_programs(0)
    two_bt, V, F = lvf_buf.shape
    Bt = two_bt // 2

    def row_copy(b, row, bt, v, slot):
        # (1, 1, F) HBM row -> (1, 1, F) VMEM slot row.
        return pltpu.make_async_copy(
            lf_hbm.at[pl.ds(b, 1), pl.ds(row, 1), :],
            lvf_buf.at[pl.ds(slot * Bt + bt, 1), pl.ds(v, 1), :],
            sem.at[slot * Bt + bt])

    def gated(b, v):
        # Fully padded predicate slots (v_label == 0 AND v >= v_l) are never
        # read by the masked compute, so skip their DMA entirely.
        return jnp.logical_or(vlab_smem[b, v] != 0, v < vl_smem[b])

    def issue(target_step, slot):
        for bt in range(Bt):
            b = target_step * Bt + bt
            for v in range(V):
                @pl.when(gated(b, v))
                def _():
                    row_copy(b, vlab_smem[b, v], bt, v, slot).start()

    def wait(target_step, slot):
        # Same per-(bt, v) gating as `issue`, so wait count == issue count;
        # every copy on sem[slot*Bt+bt] has the identical (1,1,F) size.
        for bt in range(Bt):
            b = target_step * Bt + bt
            for v in range(V):
                @pl.when(gated(b, v))
                def _():
                    row_copy(b, vlab_smem[b, v], bt, v, slot).wait()

    slot = step % 2

    @pl.when(step == 0)           # prime the pipeline on the first step
    def _():
        issue(0, 0)

    @pl.when(step + 1 < nsteps)   # prefetch the next step before waiting here
    def _():
        issue(step + 1, 1 - slot)

    wait(step, slot)

    start = pl.multiple_of(slot * Bt, Bt)
    lvf = lvf_buf[pl.ds(start, Bt), :, :].astype(jnp.float32)     # (Bt, V, F)
    _stats_from_gold_rows(lvf, rid_ref[...], vlab_ref[...], vl_ref[...],
                          loss_ref, ncorr_ref)


# ---------------------------------------------------------------------------
# Tile selection / dispatch
# ---------------------------------------------------------------------------
def _vmem_budget_bytes():
    """Per-generation budget for the double-buffered streaming buffers.

    Stays well under the default scoped-VMEM limit (16 MiB v5e / 32 MiB
    v6e & v7x) so no vmem_limit_bytes override is needed, while letting
    v5e/v6e (128 MiB VMEM) use fatter batch tiles than v7x (64 MiB)."""
    try:
        cap = pltpu.get_tpu_info().vmem_capacity_bytes
    except Exception:
        cap = 64 << 20
    return int(min(max(cap // 16, 4 << 20), 8 << 20))


def _pick_batch_tile(batch, bytes_per_batch_elem, vmem_budget, max_bt=16):
    """Largest divisor of `batch` <= max_bt that (a) leaves >= 2 grid steps
    when batch >= 2 (so v7x megacore sharding / cross-step pipelining has
    work) and (b) keeps the streaming footprint under the VMEM budget."""
    best = 1
    for cand in range(1, min(batch, max_bt) + 1):
        if batch % cand:
            continue
        if batch >= 2 and batch // cand < 2:
            continue
        if cand * bytes_per_batch_elem > vmem_budget:
            continue
        best = cand
    return best


def frame_loss_forward(log_frame, v_label, v_l, roleset_id):
    """Mirrors FrameLoss.forward with opt.use_gold_predicate == 1.

    Returns ((loss / normalizer, None), num_correct, num_prop).
    """
    B, S, F = log_frame.shape
    V = v_label.shape[1]
    itemsize = log_frame.dtype.itemsize

    rid3 = roleset_id.reshape(B, V, 1).astype(jnp.int32)
    vlab3 = v_label.reshape(B, V, 1).astype(jnp.int32)
    vl3 = v_l.reshape(B, 1, 1).astype(jnp.int32)

    budget = _vmem_budget_bytes()
    row_bytes = F * itemsize
    # Small-row fallback: scattered ~row_bytes DMAs are descriptor-bound, so
    # stream (Bt, S, F) densely instead.  Otherwise gather only the gold rows.
    use_dense = (row_bytes < 512) or (S < 2 * V)

    if use_dense:
        bytes_per_b = 2 * S * F * itemsize + 4 * (S * F + 4 * V * F + 2 * V * S)
        Bt = _pick_batch_tile(B, bytes_per_b, budget)
        cost = pl.CostEstimate(
            flops=2 * B * V * S * F + 8 * B * V * F,
            transcendentals=0,
            bytes_accessed=B * S * F * itemsize + 3 * B * V * 4 + 8 * B)
        loss_part, ncorr_part = pl.pallas_call(
            _frame_loss_dense_kernel,
            out_shape=(jax.ShapeDtypeStruct((B, 1, 1), jnp.float32),
                       jax.ShapeDtypeStruct((B, 1, 1), jnp.int32)),
            grid_spec=pltpu.PrefetchScalarGridSpec(
                num_scalar_prefetch=0,
                grid=(B // Bt,),
                in_specs=[
                    pl.BlockSpec((Bt, V, 1), lambda s: (s, 0, 0)),  # roleset_id
                    pl.BlockSpec((Bt, V, 1), lambda s: (s, 0, 0)),  # v_label
                    pl.BlockSpec((Bt, 1, 1), lambda s: (s, 0, 0)),  # v_l
                    pl.BlockSpec((Bt, S, F), lambda s: (s, 0, 0)),  # log_frame
                ],
                out_specs=[
                    pl.BlockSpec((Bt, 1, 1), lambda s: (s, 0, 0)),
                    pl.BlockSpec((Bt, 1, 1), lambda s: (s, 0, 0)),
                ],
            ),
            compiler_params=pltpu.CompilerParams(
                dimension_semantics=("parallel",)),
            cost_estimate=cost,
        )(rid3, vlab3, vl3, log_frame)
    else:
        vlab_smem = v_label.astype(jnp.int32)                      # (B, V)
        vl_smem = v_l.astype(jnp.int32)                            # (B,)
        bytes_per_b = 2 * V * F * itemsize + 4 * 6 * V * F
        Bt = _pick_batch_tile(B, bytes_per_b, budget)
        cost = pl.CostEstimate(
            flops=10 * B * V * F,
            transcendentals=0,
            bytes_accessed=B * V * F * itemsize + 3 * B * V * 4 + 8 * B)
        loss_part, ncorr_part = pl.pallas_call(
            _frame_loss_gather_kernel,
            out_shape=(jax.ShapeDtypeStruct((B, 1, 1), jnp.float32),
                       jax.ShapeDtypeStruct((B, 1, 1), jnp.int32)),
            grid_spec=pltpu.PrefetchScalarGridSpec(
                num_scalar_prefetch=2,              # v_label, v_l -> SMEM
                grid=(B // Bt,),
                in_specs=[
                    pl.BlockSpec((Bt, V, 1), lambda s, vlab, vl: (s, 0, 0)),
                    pl.BlockSpec((Bt, V, 1), lambda s, vlab, vl: (s, 0, 0)),
                    pl.BlockSpec((Bt, 1, 1), lambda s, vlab, vl: (s, 0, 0)),
                    pl.BlockSpec(memory_space=pl.ANY),            # log_frame
                ],
                out_specs=[
                    pl.BlockSpec((Bt, 1, 1), lambda s, vlab, vl: (s, 0, 0)),
                    pl.BlockSpec((Bt, 1, 1), lambda s, vlab, vl: (s, 0, 0)),
                ],
                scratch_shapes=[
                    pltpu.VMEM((2 * Bt, V, F), log_frame.dtype),  # 2 slots
                    pltpu.SemaphoreType.DMA((2 * Bt,)),
                ],
            ),
            compiler_params=pltpu.CompilerParams(
                # Cross-step double-buffering (step s issues step s+1's DMAs)
                # requires the grid to run sequentially on one core.
                dimension_semantics=("arbitrary",)),
            cost_estimate=cost,
        )(vlab_smem, vl_smem, rid3, vlab3, vl3, log_frame)

    num_prop = jnp.sum(v_l.astype(jnp.int32))     # use_gold_predicate == 1
    # NOTE: like the reference module, num_prop == 0 would give inf/nan here.
    loss = jnp.sum(loss_part) / num_prop.astype(jnp.float32)
    num_correct = jnp.sum(ncorr_part)
    return (loss, None), num_correct, num_prop


# ---------------------------------------------------------------------------
# Pure-JAX reference reproducing the PyTorch forward semantics.
# ---------------------------------------------------------------------------
def _ref_forward(log_frame, v_label, v_l, roleset_id):
    lvf = jnp.take_along_axis(
        log_frame, v_label[:, :, None], axis=1)                    # (B, V, F)
    loss_v = -jnp.take_along_axis(
        lvf, roleset_id[:, :, None], axis=2)[..., 0]                # (B, V)
    v_mask = (v_label != 0).astype(jnp.float32)
    loss = jnp.sum(loss_v * v_mask)
    num_prop = jnp.sum(v_l)
    pred = jnp.argmax(lvf, axis=-1)
    iota = jnp.arange(v_label.shape[1])[None, :]
    valid = iota < v_l[:, None]
    ncorr = jnp.sum(((pred == roleset_id) & valid).astype(jnp.int32))
    return loss / num_prop.astype(jnp.float32), ncorr


if __name__ == "__main__":
    def make_inputs(key, B, S, F, V, vl_list):
        k1, k2, k3 = jax.random.split(key, 3)
        logits = jax.random.normal(k1, (B, S, F), dtype=jnp.float32)
        log_frame = jax.nn.log_softmax(logits, axis=-1)
        v_l = jnp.array(vl_list, dtype=jnp.int32)
        iota = jnp.arange(V, dtype=jnp.int32)[None, :]
        pos = jax.random.randint(k2, (B, V), 1, S, dtype=jnp.int32)
        v_label = jnp.where(iota < v_l[:, None], pos, 0)
        rid = jax.random.randint(k3, (B, V), 1, F, dtype=jnp.int32)
        roleset_id = jnp.where(iota < v_l[:, None], rid, 0)
        return log_frame, v_label, v_l, roleset_id

    key = jax.random.PRNGKey(0)
    k_a, k_b = jax.random.split(key)

    # Case 1: small F -> dense (Bt, S, F) streaming path.
    lf1, vlab1, vl1, rid1 = make_inputs(k_a, B=2, S=16, F=32, V=8,
                                        vl_list=[3, 5])
    (loss1, _), nc1, np1 = frame_loss_forward(lf1, vlab1, vl1, rid1)
    loss1 = jax.block_until_ready(loss1)
    r_loss1, r_nc1 = _ref_forward(lf1, vlab1, vl1, rid1)
    assert jnp.allclose(loss1, r_loss1, rtol=1e-5, atol=1e-5), (loss1, r_loss1)
    assert int(nc1) == int(r_nc1), (nc1, r_nc1)

    # Case 2: long frame rows -> HBM row-gather path with cross-step
    # double buffering and padded-predicate DMA skipping.
    lf2, vlab2, vl2, rid2 = make_inputs(k_b, B=4, S=64, F=256, V=8,
                                        vl_list=[3, 6, 8, 1])
    (loss2, _), nc2, np2 = frame_loss_forward(lf2, vlab2, vl2, rid2)
    loss2 = jax.block_until_ready(loss2)
    r_loss2, r_nc2 = _ref_forward(lf2, vlab2, vl2, rid2)
    assert jnp.allclose(loss2, r_loss2, rtol=1e-5, atol=1e-5), (loss2, r_loss2)
    assert int(nc2) == int(r_nc2), (nc2, r_nc2)

    print("KERNEL_OK")
</pallas_src>

<mosaic_0001>
module attributes {stable_mosaic.version = 11 : i64} {
  func.func @_frame_loss_dense_kernel(%arg0: i32, %arg1: memref<1x8x1xi32, #tpu.memory_space<vmem>>, %arg2: memref<1x8x1xi32, #tpu.memory_space<vmem>>, %arg3: memref<1x1x1xi32, #tpu.memory_space<vmem>>, %arg4: memref<1x16x32xf32, #tpu.memory_space<vmem>>, %arg5: memref<1x1x1xf32, #tpu.memory_space<vmem>>, %arg6: memref<1x1x1xi32, #tpu.memory_space<vmem>>) attributes {dimension_semantics = [#tpu.dimension_semantics<parallel>], iteration_bounds = array<i64: 2>, scalar_prefetch = 0 : i64, scratch_operands = 0 : i64, tpu.core_type = #tpu.core_type<tc>, window_params = [{transform_indices = @transform_0, window_bounds = array<i64: 1, 8, 1>}, {transform_indices = @transform_1, window_bounds = array<i64: 1, 8, 1>}, {transform_indices = @transform_2, window_bounds = array<i64: 1, 1, 1>}, {transform_indices = @transform_3, window_bounds = array<i64: 1, 16, 32>}, {transform_indices = @transform_4, window_bounds = array<i64: 1, 1, 1>}, {transform_indices = @transform_5, window_bounds = array<i64: 1, 1, 1>}]} {
    %c0 = arith.constant 0 : index
    %c0_0 = arith.constant 0 : index
    %c0_1 = arith.constant 0 : index
    %0 = vector.load %arg4[%c0, %c0_0, %c0_1] : memref<1x16x32xf32, #tpu.memory_space<vmem>>, vector<1x16x32xf32>
    %c0_2 = arith.constant 0 : index
    %c0_3 = arith.constant 0 : index
    %c0_4 = arith.constant 0 : index
    %1 = vector.load %arg2[%c0_2, %c0_3, %c0_4] : memref<1x8x1xi32, #tpu.memory_space<vmem>>, vector<1x8x1xi32>
    %2 = tpu.iota {dimensions = array<i32: 2>} : vector<1x8x16xi32>
    %3 = vector.broadcast %1 : vector<1x8x1xi32> to vector<1x8x16xi32>
    %4 = arith.cmpi eq, %2, %3 : vector<1x8x16xi32>
    %5 = arith.extui %4 : vector<1x8x16xi1> to vector<1x8x16xi32>
    %6 = arith.sitofp %5 : vector<1x8x16xi32> to vector<1x8x16xf32>
    "tpu.trace_start"() <{level = 10 : i32, message = "bvs,bsf->bvf"}> : () -> ()
    %cst = arith.constant dense<0.000000e+00> : vector<1x8x32xf32>
    %7 = tpu.matmul %6, %0, %cst {dimension_numbers = #tpu.dot_dimension_numbers<[2], [1], [1], [2], [0, 0, 0, 1, 1, 2], [0], [0]>} : vector<1x8x16xf32>, vector<1x16x32xf32>, vector<1x8x32xf32> -> vector<1x8x32xf32>
    "tpu.trace_stop"() : () -> ()
    %c0_5 = arith.constant 0 : index
    %c0_6 = arith.constant 0 : index
    %c0_7 = arith.constant 0 : index
    %8 = vector.load %arg1[%c0_5, %c0_6, %c0_7] : memref<1x8x1xi32, #tpu.memory_space<vmem>>, vector<1x8x1xi32>
    %c0_8 = arith.constant 0 : index
    %c0_9 = arith.constant 0 : index
    %c0_10 = arith.constant 0 : index
    %9 = vector.load %arg3[%c0_8, %c0_9, %c0_10] : memref<1x1x1xi32, #tpu.memory_space<vmem>>, vector<1x1x1xi32>
    %10 = tpu.iota {dimensions = array<i32: 2>} : vector<1x8x32xi32>
    %11 = vector.broadcast %8 : vector<1x8x1xi32> to vector<1x8x32xi32>
    %12 = arith.cmpi eq, %10, %11 : vector<1x8x32xi32>
    %cst_11 = arith.constant 0.000000e+00 : f32
    %13 = vector.broadcast %cst_11 : f32 to vector<1x8x32xf32>
    %14 = arith.select %12, %7, %13 : vector<1x8x32xi1>, vector<1x8x32xf32>
    %cst_12 = arith.constant dense<0.000000e+00> : vector<1x8xf32>
    %15 = vector.multi_reduction <add>, %14, %cst_12 [2] : vector<1x8x32xf32> to vector<1x8xf32>
    %16 = vector.shape_cast %15 : vector<1x8xf32> to vector<1x8x1xf32>
    %c0_i32 = arith.constant 0 : i32
    %17 = vector.broadcast %c0_i32 : i32 to vector<1x8x1xi32>
    %18 = arith.cmpi ne, %1, %17 : vector<1x8x1xi32>
    %cst_13 = arith.constant 0.000000e+00 : f32
    %19 = vector.broadcast %cst_13 : f32 to vector<1x8x1xf32>
    %20 = arith.select %18, %16, %19 : vector<1x8x1xi1>, vector<1x8x1xf32>
    %cst_14 = arith.constant dense<0.000000e+00> : vector<1x1xf32>
    %21 = vector.multi_reduction <add>, %20, %cst_14 [1] : vector<1x8x1xf32> to vector<1x1xf32>
    %22 = vector.shape_cast %21 : vector<1x1xf32> to vector<1x1x1xf32>
    %cst_15 = arith.constant 0.000000e+00 : f32
    %23 = vector.broadcast %cst_15 : f32 to vector<1x1x1xf32>
    %24 = arith.subf %23, %22 : vector<1x1x1xf32>
    %c0_16 = arith.constant 0 : index
    %c0_17 = arith.constant 0 : index
    %c0_18 = arith.constant 0 : index
    %25 = vector.load %arg5[%c0_16, %c0_17, %c0_18] : memref<1x1x1xf32, #tpu.memory_space<vmem>>, vector<1x1x1xf32>
    tpu.vector_store %arg5[%c0_16, %c0_17, %c0_18], %24 {strides = array<i32>} : memref<1x1x1xf32, #tpu.memory_space<vmem>>, vector<1x1x1xf32>,
    %cst_19 = arith.constant dense<0xFF800000> : vector<1x8xf32>
    %26 = vector.multi_reduction <maximumf>, %7, %cst_19 [2] : vector<1x8x32xf32> to vector<1x8xf32>
    %27 = vector.shape_cast %26 : vector<1x8xf32> to vector<1x8x1xf32>
    %28 = vector.broadcast %27 : vector<1x8x1xf32> to vector<1x8x32xf32>
    %29 = arith.cmpf oeq, %7, %28 : vector<1x8x32xf32>
    %c32_i32 = arith.constant 32 : i32
    %30 = vector.broadcast %c32_i32 : i32 to vector<1x8x32xi32>
    %31 = arith.select %29, %10, %30 : vector<1x8x32xi1>, vector<1x8x32xi32>
    %cst_20 = arith.constant dense<2147483647> : vector<1x8xi32>
    %32 = vector.multi_reduction <minsi>, %31, %cst_20 [2] : vector<1x8x32xi32> to vector<1x8xi32>
    %33 = vector.shape_cast %32 : vector<1x8xi32> to vector<1x8x1xi32>
    %34 = tpu.iota {dimensions = array<i32: 1>} : vector<1x8x1xi32>
    %35 = vector.broadcast %9 : vector<1x1x1xi32> to vector<1x8x1xi32>
    %36 = arith.cmpi slt, %34, %35 : vector<1x8x1xi32>
    %37 = arith.cmpi eq, %33, %8 : vector<1x8x1xi32>
    %38 = arith.andi %37, %36 : vector<1x8x1xi1>
    %c1_i32 = arith.constant 1 : i32
    %c0_i32_21 = arith.constant 0 : i32
    %39 = vector.broadcast %c1_i32 : i32 to vector<1x8x1xi32>
    %40 = vector.broadcast %c0_i32_21 : i32 to vector<1x8x1xi32>
    %41 = arith.select %38, %39, %40 : vector<1x8x1xi1>, vector<1x8x1xi32>
    %cst_22 = arith.constant dense<0> : vector<1x1xi32>
    %42 = vector.multi_reduction <add>, %41, %cst_22 [1] : vector<1x8x1xi32> to vector<1x1xi32>
    %43 = vector.shape_cast %42 : vector<1x1xi32> to vector<1x1x1xi32>
    %c0_23 = arith.constant 0 : index
    %c0_24 = arith.constant 0 : index
    %c0_25 = arith.constant 0 : index
    %44 = vector.load %arg6[%c0_23, %c0_24, %c0_25] : memref<1x1x1xi32, #tpu.memory_space<vmem>>, vector<1x1x1xi32>
    tpu.vector_store %arg6[%c0_23, %c0_24, %c0_25], %43 {strides = array<i32>} : memref<1x1x1xi32, #tpu.memory_space<vmem>>, vector<1x1x1xi32>,
    return
  }
  func.func @transform_0(%arg0: i32) -> (i32, i32, i32) {
    %c0_i32 = arith.constant 0 : i32
    %c0_i32_0 = arith.constant 0 : i32
    %c0_i32_1 = arith.constant 0 : i32
    return %arg0, %c0_i32, %c0_i32_0 : i32, i32, i32
  }
  func.func @transform_1(%arg0: i32) -> (i32, i32, i32) {
    %c0_i32 = arith.constant 0 : i32
    %c0_i32_0 = arith.constant 0 : i32
    %c0_i32_1 = arith.constant 0 : i32
    return %arg0, %c0_i32, %c0_i32_0 : i32, i32, i32
  }
  func.func @transform_2(%arg0: i32) -> (i32, i32, i32) {
    %c0_i32 = arith.constant 0 : i32
    %c0_i32_0 = arith.constant 0 : i32
    %c0_i32_1 = arith.constant 0 : i32
    return %arg0, %c0_i32, %c0_i32_0 : i32, i32, i32
  }
  func.func @transform_3(%arg0: i32) -> (i32, i32, i32) {
    %c0_i32 = arith.constant 0 : i32
    %c0_i32_0 = arith.constant 0 : i32
    %c0_i32_1 = arith.constant 0 : i32
    return %arg0, %c0_i32, %c0_i32_0 : i32, i32, i32
  }
  func.func @transform_4(%arg0: i32) -> (i32, i32, i32) {
    %c0_i32 = arith.constant 0 : i32
    %c0_i32_0 = arith.constant 0 : i32
    %c0_i32_1 = arith.constant 0 : i32
    return %arg0, %c0_i32, %c0_i32_0 : i32, i32, i32
  }
  func.func @transform_5(%arg0: i32) -> (i32, i32, i32) {
    %c0_i32 = arith.constant 0 : i32
    %c0_i32_0 = arith.constant 0 : i32
    %c0_i32_1 = arith.constant 0 : i32
    return %arg0, %c0_i32, %c0_i32_0 : i32, i32, i32
  }
}

</mosaic_0001>

<bundles_post_ra>
// kernel: tpu_custom_call.1
= control target key start
LH: loop header
LB: loop body
LE: loop exit
PB: predicated region body
PF: predicated region fallthrough
CT: control target
= control target key end

     0   :  { %s614_s18 = smov 0   ;;  %s660_s0 = inlined_call_operand.vmem [shape: s32[2,8,1], index: 0, kind: input, shape index: {}]   ;;  %s661_s1 = inlined_call_operand.vmem [shape: s32[2,8,1], index: 1, kind: input, shape index: {}]   ;;  %s662_s2 = inlined_call_operand.vmem [shape: s32[2,1,1], index: 2, kind: input, shape index: {}]   ;;  %s663_s3 = inlined_call_operand.vmem [shape: f32[2,16,32], index: 3, kind: input, shape index: {}]   ;;  %s664_s4 = inlined_call_operand.vmem [shape: f32[2,1,1], index: 4, kind: output, shape index: {0}]   ;;  %s665_s5 = inlined_call_operand.vmem [shape: s32[2,1,1], index: 5, kind: output, shape index: {1}]  }
   0x1 LB: > { %s530_s19 = sadd.s32 4294967295, %s578_s18   ;;  %p534_p0 = scmp.ge.s32.totalorder %s578_s18, 1  ;;  %s578_s18 = sphi %s614_s18, %s16_s18  }
   0x2   : > { %p216_p1 = scmp.lt.s32.totalorder %s578_s18, 3 }
   0x4   : > { %p217_p2 = pnand %p534_p0, %p216_p1 }
   0x5   : > { %p256_p3 = scmp.lt.s32.totalorder (!%p217_p2), %s530_s19, 1  ;;  %v580_v0 = vmov (!%p217_p2), 0   ;;  %v581_v1 = vmov (!%p217_p2), 0.0|0.0   ;;  %vm582_vm0 = vmmov (!%p217_p2), 0   ;;  %v583_v6 = vmov (!%p217_p2), 0.0  }
   0x6   : > { %220 = sbr.rel (%p217_p2) target bundleno = 817 (0x331), region = 36  ;;  %570 = vset.pattern.permute.xlu0 (!%p217_p2), %v580_v0  ;;  %555 = vmatprep.subr.bf16.mxu0 (!%p217_p2), %v581_v1  ;;  %v281_v7 = vlaneseq (!%p217_p2)  ;;  %vm289_vm1 = vcmask (!%p217_p2), 130048   ;;  %vm370_vm3 = vcmask (!%p217_p2), 261120   ;;  %vm376_vm9 = vcmask (!%p217_p2), 7168  }
   0x7   : > { %571 = vset.pattern.permute.xlu1 (!%p217_p2), %v580_v0  ;;  %552 = vmatprep.mubr.msk.f32.mxu0 (!%p217_p2), %vm582_vm0, %v583_v6  ;;  %vm385_vm12 = vcmask (!%p217_p2), 0  }
   0x8   : > { %v282_v8 = vand.u32 (!%p217_p2), 127, %v281_v7  ;;  %v408_v28 = vshrl.u32 (!%p217_p2), %v281_v7, 7 }
   0xd   : > { %s667_s19 = smov (!%p256_p3, %s530_s19), 1 }
   0xe   : > { %s535_s20 = sshll.u32 %s667_s19, 3  ;;  %s544_s21 = sshll.u32 %s667_s19, 4 }
   0xf   : > { %s263_s24 = scalar_lea.vmem %s661_s1, %s535_s20  ;;  %s271_s27 = scalar_lea.vmem %s663_s3, %s544_s21 }
  0x10   : > { %v280_v2 = vld [vmem:[%s263_s24] sm:$0xff]  ;;  %v279_v4 = vld [vmem:[%s271_s27 + $0x8] sm:$0xff]  ;;  %s259_s30 = scalar_lea.vmem %s660_s0, %s535_s20  ;;  %s266_s8 = scalar_lea.vmem %s662_s2, %s667_s19 }
  0x11   : > { %v278_v3 = vld [vmem:[%s271_s27] sm:$0xff]  ;;  %284 = vperm.xlu0 %570, %v280_v2   ;;  %vm374_vm8 = vcmp.ne.s32.totalorder %v280_v2, 0  ;;  %s277_s11 = scalar_lea.vmem %s665_s5, %s667_s19  ;;  %s274_s14 = scalar_lea.vmem %s664_s4, %s667_s19 }
  0x12   : > { %v556_v5 = vpack.c.bf16 %v279_v4, %v278_v3  ;;  %v363_v19 = vld [vmem:[%s259_s30] sm:$0xff] }
  0x13   : > { %v541_v29 = vld [vmem:[%s266_s8] ss:$0 sm:$0xff] }
  0x14   : > { %557 = vmatpush3.bf16.msra.mxu0 %v556_v5  ;;  %vm413_vm7 = vcmp.lt.s32.totalorder %v408_v28, %v541_v29 }
  0x90   : > { %v285_v9 = vpop.permute.xlu0 %284 }
  0x91   : > { %vm286_vm2 = vcmp.eq.s32.totalorder %v282_v8, %v285_v9 }
  0x92   : > { %v539_v10 = vsel %vm286_vm2, 1.0, %v583_v6 }
  0x93   : > { %553 = vmatmul.mubr.msk.f32.vlgmr.msra.gmra.mrb[0].mxu0 %vm289_vm1, %v539_v10 }
 0x166   : > { %v359_v11 = vpop.f32.mrb[0].mxu0 }
 0x167   : > { %v554_v12 = vpop.f32.mrb[1].mxu0  ;;  %v387_v13 = vsel %vm370_vm3, %v359_v11, -inf }
 0x168   : > { %388 = vmax.xlane.f32.xlu0 %v387_v13 }
 0x1f5   : > { %v389_v14 = vpop.xlane.xlu0 %388 }
 0x1f6   : > { %vm390_vm4 = vcmp.eq.f32.partialorder %v359_v11, %v389_v14 }
 0x1f7   : > { %v391_v15 = vsel %vm390_vm4, %v282_v8, 32 }
 0x1f8   : > { %v392_v16 = vsel %vm370_vm3, %v391_v15, 2147483647 }
 0x1f9   : > { %v394_v17 = vshra.s32 %v392_v16, 16  ;;  %v393_v20 = vand.u32 65535, %v392_v16 }
 0x1fb   : > { %v396_v18 = vcvt.s32.f32 %v394_v17  ;;  %v395_v22 = vcvt.s32.f32 %v393_v20 }
 0x1fd   : > { %397 = vmin.xlane.f32.xlu1 %v396_v18 }
 0x20e   : > { %366 = vperm.xlu1 %571, %v363_v19  }
 0x28a   : > { %v398_v21 = vpop.xlane.xlu1 %397 }
 0x28b   : > { %vm399_vm5 = vcmp.eq.f32.partialorder %v396_v18, %v398_v21  ;;  %v404_v27 = vcvt.f32.s32 %v398_v21 }
 0x28c   : > { %v400_v23 = vsel %vm399_vm5, %v395_v22, inf }
 0x28d   : > { %401 = vmin.xlane.f32.xlu1 %v400_v23  ;;  %v405_v31 = vshll.u32 %v404_v27, 16 }
 0x28e   : > { %v367_v24 = vpop.permute.xlu1 %366 }
 0x28f   : > { %vm368_vm6 = vcmp.eq.s32.totalorder %v282_v8, %v367_v24 }
 0x290   : > { %v369_v25 = vsel %vm368_vm6, %v359_v11, 0.0 }
 0x291   : > { %v371_v26 = vsel %vm370_vm3, %v369_v25, 0.0 }
 0x292   : > { %372 = vadd.xlane.f32.xlu0 %v371_v26 }
 0x31a   : > { %v402_v30 = vpop.xlane.xlu1 %401 }
 0x31b   : > { %v403_v32 = vcvt.f32.s32 %v402_v30 }
 0x31d   : > { %v406_v33 = vadd.s32 %v405_v31, %v403_v32 }
 0x31f   : > { %vm414_vm10 = vcmp.eq.s32.totalorder %v406_v33, %v363_v19  ;;  %v373_v34 = vpop.xlane.xlu0 %372 }
 0x320   : > { %vm415_vm11 = vmand %vm414_vm10, %vm413_vm7  ;;  %v375_v35 = vsel %vm374_vm8, %v373_v34, 0.0 }
 0x321   : > { %v377_v36 = vsel %vm376_vm9, %v375_v35, 0.0  ;;  %v416_v37 = vsel %vm415_vm11, 1, %v580_v0 }
 0x322   : > { %v378_v38 = vrot.slane %v377_v36, 4  ;;  %v417_v39 = vsel %vm376_vm9, %v416_v37, 0 }
 0x323   : > { %v418_v40 = vrot.slane %v417_v39, 4 }
 0x324   : > { %v379_v41 = vadd.f32 %v378_v38, %v377_v36 }
 0x325   : > { %v419_v42 = vadd.s32 %v418_v40, %v417_v39 }
 0x326   : > { %v380_v43 = vrot.slane %v379_v41, 2 }
 0x327   : > { %v420_v44 = vrot.slane %v419_v42, 2 }
 0x328   : > { %v381_v45 = vadd.f32 %v380_v43, %v379_v41 }
 0x329   : > { %v421_v46 = vadd.s32 %v420_v44, %v419_v42 }
 0x32a   : > { %v382_v47 = vrot.slane %v381_v45, 1 }
 0x32b   : > { %v422_v48 = vrot.slane %v421_v46, 1 }
 0x32c   : > { %v383_v49 = vadd.f32 %v382_v47, %v381_v45 }
 0x32d   : > { %v423_v50 = vadd.s32 %v422_v48, %v421_v46 }
 0x32e   : > { %v384_v51 = vsub.f32 0.0, %v383_v49 }
 0x32f   : > { %424 = vst.msk [vmem:[%s277_s11] sm:$0x1] %vm385_vm12, %v423_v50 }
 0x330   : > { %386 = vst.msk [vmem:[%s274_s14] sm:$0x1] %vm385_vm12, %v384_v51 }
 0x331 PF: > { %s16_s18 = sadd.s32 1, %s578_s18  }
 0x332   : > { %p13_p4 = scmp.ge.s32.totalorder %s16_s18, 4  }
 0x334   :  { %15 = sbr.rel (!%p13_p4) target bundleno = 1 (0x1), region = 87 }

</bundles_post_ra>
